<compile_context>
chip_gen: v7x
topology: tpu7x:2x2x1
jax: 0.10.0
libtpu: 0.0.40
codegen_flags: <defaults>
</compile_context>

<pallas_src>
import functools
import math

import jax
import jax.numpy as jnp
from jax.experimental import pallas as pl
from jax.experimental.pallas import tpu as pltpu

MARGIN1 = 0.4
MARGIN2 = 2.8
EPS = 1e-6

_VMEM_LIMIT_BYTES = 48 * 1024 * 1024   # legal on v5e/v6e (128 MiB) and v7x (64 MiB)
_VMEM_BUDGET_BYTES = 36 * 1024 * 1024  # what the tile-size heuristic targets
_TILE_CAP_BYTES = 8 * 1024 * 1024      # per-input tile cap


def _dcontrastive_kernel(x1_ref, x2_ref, label_ref, out_ref, *,
                         feat, r, batch, block_rows, need_mask,
                         margin1, margin2, eps):
    """One tile of packed rows (TB, r*feat) -> (1, r) partial loss sums."""
    x1 = x1_ref[...].astype(jnp.float32)        # (TB, dp)  upcast in-kernel
    x2 = x2_ref[...].astype(jnp.float32)        # (TB, dp)
    lab = label_ref[...].astype(jnp.float32)    # (TB, r)

    diff = jnp.abs(x1 - x2) + eps               # lane-dense VPU work
    sq = diff * diff                            # (TB, dp)

    if r == 1:
        # Feature dim is already a multiple of 128 (or batch too small to pack).
        dist_sq = jnp.sum(sq, axis=-1, keepdims=True)                 # (TB, 1)
    else:
        # Segmented sum over r groups of `feat` lanes via a constant 0/1
        # segment matrix on the otherwise-idle MXU.
        dp = r * feat
        grp = jax.lax.broadcasted_iota(jnp.int32, (dp, r), 0) // feat
        col = jax.lax.broadcasted_iota(jnp.int32, (dp, r), 1)
        seg = (grp == col).astype(jnp.float32)                        # (dp, r)
        dist_sq = jnp.dot(sq, seg, preferred_element_type=jnp.float32)  # (TB, r)

    dist = jnp.sqrt(dist_sq)                    # EUP
    pos = jnp.maximum(dist - margin1, 0.0)
    neg = jnp.maximum(margin2 - dist, 0.0)
    loss = (1.0 - lab) * (pos * pos) + lab * (neg * neg)              # (TB, r)

    if need_mask:
        # Mask wrapper zero-padding and the garbage rows of a partial last
        # block (select never propagates values from the unselected branch).
        row = (pl.program_id(0) * block_rows
               + jax.lax.broadcasted_iota(jnp.int32, loss.shape, 0))
        col = jax.lax.broadcasted_iota(jnp.int32, loss.shape, 1)
        sample = row * r + col
        loss = jnp.where(sample < batch, loss, 0.0)

    # Per-tile partial sum (sublane reduce only; cross-lane + mean in wrapper).
    out_ref[0] = jnp.sum(loss, axis=0, keepdims=True)                 # (1, r)


def _pack_factor(batch, feat):
    """Samples per packed row so the packed feature dim is a multiple of 128."""
    if feat % 128 == 0:
        return 1
    r = 128 // math.gcd(feat, 128)              # power of two
    if r > 16 or (batch + r - 1) // r < 8:      # keep seg matrix tiny / M >= 8
        return 1
    return r


def _choose_block_rows(n_rows, dp, itemsize):
    """Largest packed-row tile whose pipeline buffers + in-kernel f32 temps
    fit the VMEM budget (label blocks are lane-padded to 128)."""
    upcast = 2 * dp * 4 if itemsize < 4 else 0
    row_bytes = (4 * dp * itemsize       # x1 + x2, double-buffered
                 + 2 * 128 * 4           # label blocks (lane-padded), double-buffered
                 + 2 * dp * 4            # |diff| / diff^2 full-width f32 temps
                 + 4 * 128 * 4           # per-sample lane-padded f32 temps
                 + upcast)
    tb = _VMEM_BUDGET_BYTES // row_bytes
    tb = min(tb, _TILE_CAP_BYTES // max(dp * itemsize, 1))
    if tb >= n_rows:
        return n_rows
    return max(8, (tb // 8) * 8)


def dcontrastive_loss(x1, x2, label, *, margin1=MARGIN1, margin2=MARGIN2,
                      eps=EPS, block_rows=None):
    """x1, x2: (B, D) float32/bfloat16; label: (B,) in {0, 1}. Returns f32 scalar."""
    B, D = x1.shape
    itemsize = jnp.dtype(x1.dtype).itemsize

    # Lane-dense packing: (B, D) -> (B/r, r*D), pure metadata reshape.
    r = _pack_factor(B, D)
    dp = r * D
    b_pad = ((B + r - 1) // r) * r
    if b_pad != B:
        x1 = jnp.pad(x1, ((0, b_pad - B), (0, 0)))
        x2 = jnp.pad(x2, ((0, b_pad - B), (0, 0)))
        label = jnp.pad(label, (0, b_pad - B))
    n_rows = b_pad // r

    x1p = x1.reshape(n_rows, dp)
    x2p = x2.reshape(n_rows, dp)
    labelp = label.astype(jnp.float32).reshape(n_rows, r)

    if block_rows is None:
        tb = _choose_block_rows(n_rows, dp, itemsize)
    else:
        tb = block_rows
    tb = min(tb, n_rows)
    if tb < n_rows:
        tb = max(8, (tb // 8) * 8)
    num_tiles = pl.cdiv(n_rows, tb)

    need_mask = (b_pad != B) or (n_rows % tb != 0)

    kernel = functools.partial(
        _dcontrastive_kernel, feat=D, r=r, batch=B, block_rows=tb,
        need_mask=need_mask, margin1=margin1, margin2=margin2, eps=eps)

    cost = pl.CostEstimate(
        flops=int((6 + 2 * r) * B * D + 12 * B),
        transcendentals=int(B),
        bytes_accessed=int(2 * B * D * itemsize + 4 * B + 4 * num_tiles * r),
    )

    partials = pl.pallas_call(
        kernel,
        out_shape=jax.ShapeDtypeStruct((num_tiles, 1, r), jnp.float32),
        grid=(num_tiles,),
        in_specs=[
            pl.BlockSpec((tb, dp), lambda i: (i, 0)),
            pl.BlockSpec((tb, dp), lambda i: (i, 0)),
            pl.BlockSpec((tb, r), lambda i: (i, 0)),
        ],
        out_specs=pl.BlockSpec((1, 1, r), lambda i: (i, 0, 0)),
        compiler_params=pltpu.CompilerParams(
            dimension_semantics=("parallel",),   # per-tile partials -> megacore OK
            vmem_limit_bytes=_VMEM_LIMIT_BYTES,
        ),
        cost_estimate=cost,
    )(x1p, x2p, labelp)

    return jnp.sum(partials) / B


def _reference(x1, x2, label, margin1=MARGIN1, margin2=MARGIN2, eps=EPS):
    x1 = x1.astype(jnp.float32)
    x2 = x2.astype(jnp.float32)
    label = label.astype(jnp.float32)
    diff = jnp.abs(x1 - x2)
    dist = jnp.sqrt(jnp.sum((diff + eps) ** 2, axis=1))
    mpos = jnp.maximum(dist - margin1, 0.0)
    mneg = jnp.maximum(margin2 - dist, 0.0)
    return jnp.mean((1.0 - label) * mpos ** 2 + label * mneg ** 2)


if __name__ == "__main__":
    key = jax.random.PRNGKey(0)
    k = jax.random.split(key, 9)

    # Case 1: tiny module-sized batch (no packing, single tile, no mask).
    B, D = 8, 32
    x1 = jax.random.normal(k[0], (B, D), dtype=jnp.float32)
    x2 = jax.random.normal(k[1], (B, D), dtype=jnp.float32)
    lab = (jax.random.uniform(k[2], (B,)) > 0.5).astype(jnp.float32)
    out = dcontrastive_loss(x1, x2, lab)
    jax.block_until_ready(out)
    ref = _reference(x1, x2, lab)
    assert jnp.allclose(out, ref, atol=1e-5, rtol=1e-5), (out, ref)

    # Case 2: bf16 inputs streamed natively, lane-packed rows (r=4), multi-tile
    # grid with a masked tail (75 packed rows, 16-row blocks, MXU segmented sum).
    # Tolerance allows for the different summation order / MXU f32 passes.
    B2, D2 = 300, 32
    x1b = jax.random.normal(k[3], (B2, D2), dtype=jnp.float32).astype(jnp.bfloat16)
    x2b = jax.random.normal(k[4], (B2, D2), dtype=jnp.float32).astype(jnp.bfloat16)
    labb = (jax.random.uniform(k[5], (B2,)) > 0.5).astype(jnp.float32)
    out2 = dcontrastive_loss(x1b, x2b, labb, block_rows=16)
    jax.block_until_ready(out2)
    ref2 = _reference(x1b, x2b, labb)
    assert jnp.allclose(out2, ref2, atol=5e-3, rtol=5e-3), (out2, ref2)

    # Case 3: batch not divisible by the packing factor (wrapper zero-pad +
    # in-kernel sample mask), single full-size tile.
    B3, D3 = 34, 32
    x1c = jax.random.normal(k[6], (B3, D3), dtype=jnp.float32)
    x2c = jax.random.normal(k[7], (B3, D3), dtype=jnp.float32)
    labc = (jax.random.uniform(k[8], (B3,)) > 0.5).astype(jnp.float32)
    out3 = dcontrastive_loss(x1c, x2c, labc)
    jax.block_until_ready(out3)
    ref3 = _reference(x1c, x2c, labc)
    assert jnp.allclose(out3, ref3, atol=5e-3, rtol=5e-3), (out3, ref3)

    print("KERNEL_OK")
</pallas_src>

<mosaic_0001>
module attributes {stable_mosaic.version = 11 : i64} {
  func.func @_dcontrastive_kernel(%arg0: i32, %arg1: memref<8x32xf32, #tpu.memory_space<vmem>>, %arg2: memref<8x32xf32, #tpu.memory_space<vmem>>, %arg3: memref<8x1xf32, #tpu.memory_space<vmem>>, %arg4: memref<1x1x1xf32, #tpu.memory_space<vmem>>) attributes {dimension_semantics = [#tpu.dimension_semantics<parallel>], iteration_bounds = array<i64: 1>, scalar_prefetch = 0 : i64, scratch_operands = 0 : i64, tpu.core_type = #tpu.core_type<tc>, window_params = [{transform_indices = @transform_0, window_bounds = array<i64: 8, 32>}, {transform_indices = @transform_1, window_bounds = array<i64: 8, 32>}, {transform_indices = @transform_2, window_bounds = array<i64: 8, 1>}, {transform_indices = @transform_3, window_bounds = array<i64: 1, 1, 1>}]} {
    %c0 = arith.constant 0 : index
    %c0_0 = arith.constant 0 : index
    %0 = vector.load %arg1[%c0, %c0_0] : memref<8x32xf32, #tpu.memory_space<vmem>>, vector<8x32xf32>
    %c0_1 = arith.constant 0 : index
    %c0_2 = arith.constant 0 : index
    %1 = vector.load %arg2[%c0_1, %c0_2] : memref<8x32xf32, #tpu.memory_space<vmem>>, vector<8x32xf32>
    %c0_3 = arith.constant 0 : index
    %c0_4 = arith.constant 0 : index
    %2 = vector.load %arg3[%c0_3, %c0_4] : memref<8x1xf32, #tpu.memory_space<vmem>>, vector<8x1xf32>
    %3 = arith.subf %0, %1 : vector<8x32xf32>
    %4 = math.absf %3 : vector<8x32xf32>
    %cst = arith.constant 9.99999997E-7 : f32
    %5 = vector.broadcast %cst : f32 to vector<8x32xf32>
    %6 = arith.addf %4, %5 : vector<8x32xf32>
    %7 = arith.mulf %6, %6 : vector<8x32xf32>
    %cst_5 = arith.constant dense<0.000000e+00> : vector<8xf32>
    %8 = vector.multi_reduction <add>, %7, %cst_5 [1] : vector<8x32xf32> to vector<8xf32>
    %9 = vector.shape_cast %8 : vector<8xf32> to vector<8x1xf32>
    %10 = math.sqrt %9 : vector<8x1xf32>
    %cst_6 = arith.constant 4.000000e-01 : f32
    %11 = vector.broadcast %cst_6 : f32 to vector<8x1xf32>
    %12 = arith.subf %10, %11 : vector<8x1xf32>
    %cst_7 = arith.constant 0.000000e+00 : f32
    %13 = vector.broadcast %cst_7 : f32 to vector<8x1xf32>
    %14 = arith.maximumf %12, %13 : vector<8x1xf32>
    %cst_8 = arith.constant 2.800000e+00 : f32
    %15 = vector.broadcast %cst_8 : f32 to vector<8x1xf32>
    %16 = arith.subf %15, %10 : vector<8x1xf32>
    %cst_9 = arith.constant 0.000000e+00 : f32
    %17 = vector.broadcast %cst_9 : f32 to vector<8x1xf32>
    %18 = arith.maximumf %16, %17 : vector<8x1xf32>
    %cst_10 = arith.constant 1.000000e+00 : f32
    %19 = vector.broadcast %cst_10 : f32 to vector<8x1xf32>
    %20 = arith.subf %19, %2 : vector<8x1xf32>
    %21 = arith.mulf %14, %14 : vector<8x1xf32>
    %22 = arith.mulf %20, %21 : vector<8x1xf32>
    %23 = arith.mulf %18, %18 : vector<8x1xf32>
    %24 = arith.mulf %2, %23 : vector<8x1xf32>
    %25 = arith.addf %22, %24 : vector<8x1xf32>
    %cst_11 = arith.constant dense<0.000000e+00> : vector<1xf32>
    %26 = vector.multi_reduction <add>, %25, %cst_11 [0] : vector<8x1xf32> to vector<1xf32>
    %27 = vector.shape_cast %26 : vector<1xf32> to vector<1x1xf32>
    %c0_12 = arith.constant 0 : index
    %c0_13 = arith.constant 0 : index
    %c0_14 = arith.constant 0 : index
    %28 = vector.load %arg4[%c0_12, %c0_13, %c0_14] : memref<1x1x1xf32, #tpu.memory_space<vmem>>, vector<1x1x1xf32>
    %29 = vector.shape_cast %28 : vector<1x1x1xf32> to vector<1x1xf32>
    %30 = vector.shape_cast %27 : vector<1x1xf32> to vector<1x1x1xf32>
    tpu.vector_store %arg4[%c0_12, %c0_13, %c0_14], %30 {strides = array<i32>} : memref<1x1x1xf32, #tpu.memory_space<vmem>>, vector<1x1x1xf32>,
    return
  }
  func.func @transform_0(%arg0: i32) -> (i32, i32) {
    %c0_i32 = arith.constant 0 : i32
    %c0_i32_0 = arith.constant 0 : i32
    return %arg0, %c0_i32 : i32, i32
  }
  func.func @transform_1(%arg0: i32) -> (i32, i32) {
    %c0_i32 = arith.constant 0 : i32
    %c0_i32_0 = arith.constant 0 : i32
    return %arg0, %c0_i32 : i32, i32
  }
  func.func @transform_2(%arg0: i32) -> (i32, i32) {
    %c0_i32 = arith.constant 0 : i32
    %c0_i32_0 = arith.constant 0 : i32
    return %arg0, %c0_i32 : i32, i32
  }
  func.func @transform_3(%arg0: i32) -> (i32, i32, i32) {
    %c0_i32 = arith.constant 0 : i32
    %c0_i32_0 = arith.constant 0 : i32
    %c0_i32_1 = arith.constant 0 : i32
    return %arg0, %c0_i32, %c0_i32_0 : i32, i32, i32
  }
}

</mosaic_0001>

<bundles_post_ra>
// kernel: tpu_custom_call.1
= control target key start
LH: loop header
LB: loop body
LE: loop exit
PB: predicated region body
PF: predicated region fallthrough
CT: control target
= control target key end

     0   :  { %8 = vsyncpa [#allocation3], 0  ;;  %s185_s0 = inlined_call_operand.vmem [shape: f32[8,32], index: 0, kind: input, shape index: {}]   ;;  %s186_s1 = inlined_call_operand.hbm [shape: f32[8,32], index: 1, kind: input, shape index: {}]   ;;  %s187_s2 = inlined_call_operand.vmem [shape: f32[8,1], index: 2, kind: input, shape index: {}]   ;;  %s188_s3 = inlined_call_operand.hbm [shape: f32[1,1,1], index: 3, kind: output, shape index: {}]  }
   0x1   :  { %9 = vsyncpa [#allocation4], 0  ;;  %s133_s12 = smov [#allocation2]   ;;  %s85_s16 = scalar_lea.hbm %s186_s1, 128 }
   0x2   :  { %s18_s13 = sshll.u32 %s133_s12, 4  ;;  %p86_p0 = scmp.ne.s32.totalorder %s186_s1, %s85_s16  ;;  %s19_s13 = int_to_ptr.vmem [resolvable:$true] %s18_s13 }
   0x3   :  { %p89_p1 = scmp.lt.u32.totalorder %s85_s16, %s186_s1 }
   0x5   :  { %p91_p2 = pnand %p89_p1, %p86_p0 }
   0x7   :  { %94 = shalt.err (!%p91_p2)
}
   0x8   :  { %s95_s21 = scalar_lea.vmem %s19_s13, 128  ;;  %p100_p4 = scmp.lt.s32.totalorder %s19_s13, %s19_s13 }
   0x9   :  { %p96_p3 = scmp.ne.s32.totalorder %s19_s13, %s95_s21  ;;  %p101_p5 = scmp.lt.s32.totalorder %s95_s21, %s95_s21 }
   0xb   :  { %p102_p6 = por %p101_p5, %p100_p4 }
   0xd   :  { %p103_p7 = pnand %p102_p6, %p96_p3 }
   0xf   :  { %106 = shalt.err (!%p103_p7)
}
  0x10   :  { %21 = dma.hbm_to_vmem [thread:$0]  %s186_s1, 128, %s19_s13, [#allocation3]  }
  0x11   :  { %129 = dma.done.wait [#allocation3], 128  }
  0x12   :  { %130 = vsyncadd [#allocation3], 4294967168  ;;  %v27_v0 = vld [vmem:[%s185_s0] sm:$0xff]  ;;  %vm34_vm0 = vcmask 261120   ;;  %vm55_vm3 = vcmask 7168   ;;  %s134_s0 = smov [#allocation5]  }
  0x13   :  { %v28_v1 = vld [vmem:[#allocation2] sm:$0xff]  ;;  %s71_s27 = sshll.u32 %s134_s0, 4  ;;  %vm63_vm4 = vcmask 0   ;;  %s72_s27 = int_to_ptr.vmem [resolvable:$true] %s71_s27 }
  0x14   :  { %v30_v2 = vsub.f32 %v27_v0, %v28_v1  ;;  %v29_v12 = vld [vmem:[%s187_s2] sm:$0xff]  ;;  %s107_s2 = scalar_lea.vmem %s72_s27, 16  ;;  %s111_s28 = scalar_lea.vmem %s72_s27, 32 }
  0x15   :  { %v49_v18 = vsub.f32 1.0, %v29_v12  ;;  %p108_p8 = scmp.ne.s32.totalorder %s72_s27, %s107_s2  ;;  %p112_p9 = scmp.lt.s32.totalorder %s72_s27, %s72_s27 }
  0x16   :  { %v31_v3 = vand.u32 2147483647, %v30_v2  ;;  %p113_p10 = scmp.lt.s32.totalorder %s111_s28, %s107_s2 }
  0x18   :  { %v32_v4 = vadd.f32 1e-06, %v31_v3  ;;  %p114_p11 = por %p113_p10, %p112_p9 }
  0x1a   :  { %v33_v5 = vmul.f32 %v32_v4, %v32_v4  ;;  %p115_p12 = pnand %p114_p11, %p108_p8 }
  0x1c   :  { %v35_v6 = vsel %vm34_vm0, %v33_v5, 0.0 }
  0x1d   :  { %36 = vadd.xlane.f32.xlu0 %v35_v6 }
  0xaa   :  { %v37_v7 = vpop.xlane.xlu0 %36 }
  0xab   :  { %83 = vrsqrt.f32 %v37_v7  ;;  %vm40_vm1 = vcmp.eq.f32.partialorder %v37_v7, inf  ;;  %v43_v10 = vand.u32 2147483648, %v37_v7  ;;  %vm42_vm2 = vcmp.eq.f32.partialorder %v37_v7, 0.0 }
  0xb5   :  { %v84_v8 = vpop.eup %83 }
  0xb6   :  { %v39_v9 = vmul.f32 %v84_v8, %v37_v7 }
  0xb8   :  { %v41_v11 = vsel %vm40_vm1, %v37_v7, %v39_v9 }
  0xb9   :  { %v44_v13 = vsel %vm42_vm2, %v43_v10, %v41_v11 }
  0xba   :  { %v80_v14 = vadd.f32 -0.4, %v44_v13  ;;  %v47_v15 = vsub.f32 2.8, %v44_v13 }
  0xbc   :  { %v46_v16 = vmax.f32 %v80_v14, 0.0  ;;  %v48_v17 = vmax.f32 %v47_v15, 0.0 }
  0xbe   :  { %v50_v19 = vmul.f32 %v46_v16, %v46_v16  ;;  %v52_v20 = vmul.f32 %v48_v17, %v48_v17 }
  0xc0   :  { %v51_v21 = vmul.f32 %v50_v19, %v49_v18  ;;  %v53_v22 = vmul.f32 %v52_v20, %v29_v12 }
  0xc2   :  { %v54_v23 = vadd.f32 %v53_v22, %v51_v21 }
  0xc4   :  { %v56_v24 = vsel %vm55_vm3, %v54_v23, 0.0 }
  0xc5   :  { %v57_v25 = vrot.slane %v56_v24, 4 }
  0xc7   :  { %v58_v26 = vadd.f32 %v57_v25, %v56_v24 }
  0xc9   :  { %v59_v27 = vrot.slane %v58_v26, 2 }
  0xcb   :  { %v60_v28 = vadd.f32 %v59_v27, %v58_v26 }
  0xcd   :  { %v61_v29 = vrot.slane %v60_v28, 1 }
  0xcf   :  { %v62_v30 = vadd.f32 %v61_v29, %v60_v28 }
  0xd1   :  { %64 = vst.msk [vmem:[#allocation5] sm:$0x1] %vm63_vm4, %v62_v30 }
  0xd2   :  { %118 = shalt.err (!%p115_p12)
}
  0xd3   :  { %s119_s4 = scalar_lea.hbm %s188_s3, 16 }
  0xd4   :  { %p120_p13 = scmp.ne.s32.totalorder %s188_s3, %s119_s4  ;;  %p123_p0 = scmp.lt.u32.totalorder %s119_s4, %s188_s3 }
  0xd6   :  { %p125_p1 = pnand %p123_p0, %p120_p13 }
  0xd8   :  { %128 = shalt.err (!%p125_p1)
}
  0xd9   :  { %74 = dma.vmem_to_hbm [thread:$0]  %s72_s27, 16, %s188_s3, [#allocation4]  }
  0xda   :  { %131 = dma.done.wait [#allocation4], 16  }
  0xdb   :  { %132 = vsyncadd [#allocation4], 4294967280 }
  0xdc   :  { %78 = vsyncpa [#allocation3], 1 }
  0xdd   :  { %79 = vsyncpa [#allocation4], 1 }

</bundles_post_ra>
